<compile_context>
chip_gen: v7x
topology: tpu7x:2x2x1
jax: 0.10.0
libtpu: 0.0.40
codegen_flags: <defaults>
</compile_context>

<pallas_src>
import functools

import jax
import jax.numpy as jnp
from jax.experimental import pallas as pl
from jax.experimental.pallas import tpu as pltpu


_NEG_BIG = 1e30       # additive bias for non-edges; exp underflows to 0 after row-max shift
_NEG_SLOPE = 0.2      # GATConv default negative_slope


def _round_up(x, m):
    return (x + m - 1) // m * m


def _vmem_limit_bytes():
    """Generation-aware scoped-VMEM budget (leave headroom for double buffers)."""
    try:
        cap = int(pltpu.get_tpu_info().vmem_capacity_bytes)
    except Exception:
        cap = 64 * 1024 * 1024
    # v5e/v6e (128 MiB) -> 100 MiB; v7x (64 MiB) -> 48 MiB.
    return max(32 * 1024 * 1024, min(cap - 16 * 1024 * 1024, 100 * 1024 * 1024))


# ---------------------------------------------------------------------------
# projection kernel: hf = x @ W ; alpha_src = hf @ Asrc ; alpha_dst = hf @ Adst
# ---------------------------------------------------------------------------
def _project_kernel(x_ref, w_ref, asrc_ref, adst_ref,
                    hf_ref, alpha_src_ref, alpha_dst_ref):
    x = x_ref[...].astype(jnp.bfloat16)
    w = w_ref[...].astype(jnp.bfloat16)
    hf = jnp.dot(x, w, preferred_element_type=jnp.float32)              # (T, H*F)
    hf_bf = hf.astype(jnp.bfloat16)
    hf_ref[...] = hf_bf
    alpha_src_ref[...] = jnp.dot(hf_bf, asrc_ref[...].astype(jnp.bfloat16),
                                 preferred_element_type=jnp.float32)    # (T, H)
    alpha_dst_ref[...] = jnp.dot(hf_bf, adst_ref[...].astype(jnp.bfloat16),
                                 preferred_element_type=jnp.float32)    # (T, H)


def _project(x, w, a_src_mat, a_dst_mat, *, tile):
    n_pad, f_in = x.shape
    hf_w = w.shape[1]
    heads = a_src_mat.shape[1]
    return pl.pallas_call(
        _project_kernel,
        out_shape=(
            jax.ShapeDtypeStruct((n_pad, hf_w), jnp.bfloat16),
            jax.ShapeDtypeStruct((n_pad, heads), jnp.float32),
            jax.ShapeDtypeStruct((n_pad, heads), jnp.float32),
        ),
        grid_spec=pltpu.PrefetchScalarGridSpec(
            num_scalar_prefetch=0,
            grid=(n_pad // tile,),
            in_specs=[
                pl.BlockSpec((tile, f_in), lambda i: (i, 0)),
                pl.BlockSpec((f_in, hf_w), lambda i: (0, 0)),
                pl.BlockSpec((hf_w, heads), lambda i: (0, 0)),
                pl.BlockSpec((hf_w, heads), lambda i: (0, 0)),
            ],
            out_specs=(
                pl.BlockSpec((tile, hf_w), lambda i: (i, 0)),
                pl.BlockSpec((tile, heads), lambda i: (i, 0)),
                pl.BlockSpec((tile, heads), lambda i: (i, 0)),
            ),
        ),
        compiler_params=pltpu.CompilerParams(
            dimension_semantics=("parallel",),
            vmem_limit_bytes=_vmem_limit_bytes(),
        ),
    )(x, w, a_src_mat, a_dst_mat)


# ---------------------------------------------------------------------------
# attention kernel: online softmax over src tiles, heads batched
# ---------------------------------------------------------------------------
def _attention_kernel(adst_ref, asrc_ref, hf_ref, mask_ref, sel_ref, comb_ref,
                      bias_ref, out_ref, m_scr, l_scr, acc_scr,
                      *, heads, activation):
    j = pl.program_id(1)

    @pl.when(j == 0)
    def _():
        m_scr[...] = jnp.full(m_scr.shape, -jnp.inf, m_scr.dtype)
        l_scr[...] = jnp.zeros(l_scr.shape, l_scr.dtype)
        acc_scr[...] = jnp.zeros(acc_scr.shape, acc_scr.dtype)

    # e[h, i, j] = leaky_relu(alpha_dst[h, i] + alpha_src[h, j]) + mask[i, j]
    # TODO(synk): optional bf16 score/softmax path for v6e/v7x (keep m/l in f32).
    e = adst_ref[...] + asrc_ref[...]                       # (H,TI,1)+(H,1,TJ)->(H,TI,TJ)
    e = jnp.where(e > 0, e, _NEG_SLOPE * e)                 # leaky_relu
    e = e + mask_ref[...][None, :, :]                       # bf16 mask upcasts inside add

    m_cur = jnp.max(e, axis=-1, keepdims=True)              # (H, TI, 1)
    m_new = jnp.maximum(m_scr[...], m_cur)
    corr = jnp.exp(m_scr[...] - m_new)
    p = jnp.exp(e - m_new)                                  # masked entries underflow to 0
    l_scr[...] = corr * l_scr[...] + jnp.sum(p, axis=-1, keepdims=True)

    hf = hf_ref[...]                                        # (TJ, H*F) bf16
    hf_b = jnp.broadcast_to(hf[None], (heads,) + hf.shape)  # (H, TJ, H*F)
    acc_scr[...] = corr * acc_scr[...] + jnp.einsum(
        'hij,hjk->hik', p.astype(jnp.bfloat16), hf_b,
        preferred_element_type=jnp.float32)                 # (H, TI, H*F)
    m_scr[...] = m_new

    @pl.when(j == pl.num_programs(1) - 1)
    def _():
        out = acc_scr[...] * pl.reciprocal(l_scr[...], approx=True)    # (H, TI, H*F)
        merged = jnp.sum(out * sel_ref[...], axis=0)                   # (TI, H*F), lane-aligned
        y = jnp.dot(merged, comb_ref[...],
                    preferred_element_type=jnp.float32) + bias_ref[...]
        if activation == "elu":
            y = jnp.where(y > 0, y, jnp.exp(jnp.minimum(y, 0.0)) - 1.0)
        elif activation == "logsigmoid":
            y = jnp.minimum(y, 0.0) - jnp.log1p(jnp.exp(-jnp.abs(y)))
        out_ref[...] = y.astype(out_ref.dtype)


def _attention(alpha_dst_b, alpha_src_b, hf, mask_bias, sel, comb, bias,
               *, heads, tile_i, tile_j, activation):
    _, n_pad, _ = alpha_dst_b.shape
    hf_w = hf.shape[1]
    out_w = comb.shape[1]
    kernel = functools.partial(_attention_kernel, heads=heads, activation=activation)
    return pl.pallas_call(
        kernel,
        out_shape=jax.ShapeDtypeStruct((n_pad, out_w), jnp.float32),
        grid_spec=pltpu.PrefetchScalarGridSpec(
            num_scalar_prefetch=0,
            grid=(n_pad // tile_i, n_pad // tile_j),
            in_specs=[
                pl.BlockSpec((heads, tile_i, 1), lambda i, j: (0, i, 0)),   # alpha_dst
                pl.BlockSpec((heads, 1, tile_j), lambda i, j: (0, 0, j)),   # alpha_src
                pl.BlockSpec((tile_j, hf_w), lambda i, j: (j, 0)),          # src features
                pl.BlockSpec((tile_i, tile_j), lambda i, j: (i, j)),        # bf16 adj bias
                pl.BlockSpec((heads, 1, hf_w), lambda i, j: (0, 0, 0)),     # head selector
                pl.BlockSpec((hf_w, out_w), lambda i, j: (0, 0)),           # combine matrix
                pl.BlockSpec((1, out_w), lambda i, j: (0, 0)),              # bias
            ],
            out_specs=pl.BlockSpec((tile_i, out_w), lambda i, j: (i, 0)),
            scratch_shapes=[
                pltpu.VMEM((heads, tile_i, 1), jnp.float32),     # running max
                pltpu.VMEM((heads, tile_i, 1), jnp.float32),     # running denom
                pltpu.VMEM((heads, tile_i, hf_w), jnp.float32),  # accumulator
            ],
        ),
        compiler_params=pltpu.CompilerParams(
            dimension_semantics=("parallel", "arbitrary"),
            vmem_limit_bytes=_vmem_limit_bytes(),
        ),
    )(alpha_dst_b, alpha_src_b, hf, mask_bias, sel, comb, bias)


# ---------------------------------------------------------------------------
# GATConv layer = projection kernel + attention kernel
# ---------------------------------------------------------------------------
def _block_diag_att(att):
    """(heads, f_out) attention vector -> (heads*f_out, heads) block-diagonal."""
    heads, f_out = att.shape
    sel = jnp.repeat(jnp.eye(heads, dtype=jnp.float32), f_out, axis=0)   # (H*F, H)
    return sel * att.reshape(heads * f_out, 1).astype(jnp.float32)


def _gat_conv(x, w, att_src, att_dst, bias, mask_bias, *, heads, f_out, concat,
              activation, tile_i, tile_j):
    hf_w = heads * f_out
    a_src_mat = _block_diag_att(att_src)
    a_dst_mat = _block_diag_att(att_dst)
    hf, alpha_src, alpha_dst = _project(
        x.astype(jnp.float32), w.astype(jnp.float32), a_src_mat, a_dst_mat, tile=tile_i)

    # head-major, broadcast-ready layouts (tiny (N, H) transposes done by XLA)
    alpha_dst_b = alpha_dst.T[:, :, None]            # (H, N, 1)
    alpha_src_b = alpha_src.T[:, None, :]            # (H, 1, N)

    # lane-aligned per-head block selector and combine matrix
    sel = jnp.repeat(jnp.eye(heads, dtype=jnp.float32), f_out, axis=1)[:, None, :]  # (H,1,H*F)
    if concat:
        comb = jnp.eye(hf_w, dtype=jnp.float32)                                # keep blocks
    else:
        comb = jnp.tile(jnp.eye(f_out, dtype=jnp.float32), (heads, 1)) / heads  # head mean

    return _attention(alpha_dst_b, alpha_src_b, hf, mask_bias, sel, comb,
                      bias.reshape(1, -1).astype(jnp.float32),
                      heads=heads, tile_i=tile_i, tile_j=tile_j, activation=activation)


def edge_index_to_mask_bias(edge_index, n_pad):
    """bf16 additive adjacency bias: 0 on edges/self-loops, -1e30 elsewhere.

    adj[dst, src] convention. Self-loops on every node (including padded ones)
    keep every softmax row finite, which the -1e30 masking trick relies on.
    """
    src, dst = edge_index[0], edge_index[1]
    adj = jnp.zeros((n_pad, n_pad), jnp.float32).at[dst, src].set(1.0)
    adj = jnp.maximum(adj, jnp.eye(n_pad, dtype=jnp.float32))
    return jnp.where(adj > 0, 0.0, -_NEG_BIG).astype(jnp.bfloat16)


def init_gat_params(key, in_features, num_classes=3, hid=5, in_head=5, out_head=1):
    ks = jax.random.split(key, 8)
    scale = 0.1
    params = {
        # conv1: GATConv(in_features, hid, heads=in_head) -> concat, out hid*in_head
        "w1": jax.random.normal(ks[0], (in_features, in_head * hid), jnp.float32) * scale,
        "asrc1": jax.random.normal(ks[1], (in_head, hid), jnp.float32) * scale,
        "adst1": jax.random.normal(ks[2], (in_head, hid), jnp.float32) * scale,
        "b1": jax.random.normal(ks[3], (in_head * hid,), jnp.float32) * scale,
        # conv2: GATConv(hid*in_head, num_classes, heads=out_head, concat=False)
        "w2": jax.random.normal(ks[4], (in_head * hid, out_head * num_classes), jnp.float32) * scale,
        "asrc2": jax.random.normal(ks[5], (out_head, num_classes), jnp.float32) * scale,
        "adst2": jax.random.normal(ks[6], (out_head, num_classes), jnp.float32) * scale,
        "b2": jax.random.normal(ks[7], (num_classes,), jnp.float32) * scale,
    }
    return params, dict(hid=hid, in_head=in_head, out_head=out_head,
                        num_classes=num_classes)


def gat_forward(params, cfg, x, edge_index, *, tile_i=None, tile_j=None):
    n = x.shape[0]
    if tile_i is None:
        tile_i = 256 if n > 256 else 128
    if tile_j is None:
        tile_j = tile_i
    n_pad = _round_up(n, max(tile_i, tile_j))
    x_pad = jnp.zeros((n_pad, x.shape[1]), jnp.float32).at[:n].set(x.astype(jnp.float32))
    # TODO(synk): for very large / sparse graphs, replace the dense (N, N) bias
    # with per-dst-tile neighbour lists gathered via scalar-prefetch index_maps.
    mask_bias = edge_index_to_mask_bias(edge_index, n_pad)

    h1, f1 = cfg["in_head"], cfg["hid"]
    h2, f2 = cfg["out_head"], cfg["num_classes"]

    # F.dropout(p=0.6) calls are identities in eval mode.
    hmid = _gat_conv(x_pad, params["w1"], params["asrc1"], params["adst1"], params["b1"],
                     mask_bias, heads=h1, f_out=f1, concat=True, activation="elu",
                     tile_i=tile_i, tile_j=tile_j)
    out = _gat_conv(hmid, params["w2"], params["asrc2"], params["adst2"], params["b2"],
                    mask_bias, heads=h2, f_out=f2, concat=False, activation="logsigmoid",
                    tile_i=tile_i, tile_j=tile_j)
    return out[:n]


# ---------------------------------------------------------------------------
# pure-JAX reference (for correctness check only)
# ---------------------------------------------------------------------------
def _gat_conv_ref(x, w, att_src, att_dst, bias, adj, heads, f_out, concat):
    n = x.shape[0]
    hf = (x @ w).reshape(n, heads, f_out)
    a_src = jnp.einsum('nhf,hf->nh', hf, att_src)
    a_dst = jnp.einsum('nhf,hf->nh', hf, att_dst)
    e = a_dst[:, None, :] + a_src[None, :, :]                 # (dst, src, head)
    e = jnp.where(e > 0, e, _NEG_SLOPE * e)
    e = jnp.where(adj[:, :, None] > 0, e, -jnp.inf)
    attn = jax.nn.softmax(e, axis=1)
    out = jnp.einsum('ijh,jhf->ihf', attn, hf)
    out = out.reshape(n, heads * f_out) if concat else out.mean(axis=1)
    return out + bias


def gat_forward_ref(params, cfg, x, edge_index):
    n = x.shape[0]
    src, dst = edge_index[0], edge_index[1]
    adj = jnp.zeros((n, n), jnp.float32).at[dst, src].set(1.0)
    adj = jnp.maximum(adj, jnp.eye(n, dtype=jnp.float32))
    h = _gat_conv_ref(x, params["w1"], params["asrc1"], params["adst1"], params["b1"],
                      adj, cfg["in_head"], cfg["hid"], True)
    h = jnp.where(h > 0, h, jnp.exp(jnp.minimum(h, 0.0)) - 1.0)
    h = _gat_conv_ref(h, params["w2"], params["asrc2"], params["adst2"], params["b2"],
                      adj, cfg["out_head"], cfg["num_classes"], False)
    return jax.nn.log_sigmoid(h)


if __name__ == "__main__":
    key = jax.random.PRNGKey(0)
    k_x, k_p = jax.random.split(key)

    N, F_IN = 16, 8                       # data.x: (num_nodes, num_node_features)
    x = jax.random.normal(k_x, (N, F_IN), jnp.float32)

    # synthetic edge_index (2, E): a bidirectional ring
    src = jnp.arange(N, dtype=jnp.int32)
    dst = (src + 1) % N
    edge_index = jnp.concatenate(
        [jnp.stack([src, dst], axis=0), jnp.stack([dst, src], axis=0)], axis=1)

    params, cfg = init_gat_params(k_p, F_IN, num_classes=3)

    out = gat_forward(params, cfg, x, edge_index)
    out = jax.block_until_ready(out)

    assert out.shape == (N, 3), out.shape
    assert bool(jnp.all(jnp.isfinite(out)))
    assert bool(jnp.all(out <= 0.0))      # logsigmoid output is <= 0

    ref = gat_forward_ref(params, cfg, x, edge_index)
    max_err = float(jnp.max(jnp.abs(out - ref)))
    assert max_err < 5e-2, f"max abs err vs reference: {max_err}"

    print("KERNEL_OK")
</pallas_src>

<mosaic_0001>
module attributes {stable_mosaic.version = 11 : i64} {
  func.func @_project_kernel(%arg0: i32, %arg1: memref<128x8xf32, #tpu.memory_space<vmem>>, %arg2: memref<8x25xf32, #tpu.memory_space<vmem>>, %arg3: memref<25x5xf32, #tpu.memory_space<vmem>>, %arg4: memref<25x5xf32, #tpu.memory_space<vmem>>, %arg5: memref<128x25xbf16, #tpu.memory_space<vmem>>, %arg6: memref<128x5xf32, #tpu.memory_space<vmem>>, %arg7: memref<128x5xf32, #tpu.memory_space<vmem>>) attributes {dimension_semantics = [#tpu.dimension_semantics<parallel>], iteration_bounds = array<i64: 1>, scalar_prefetch = 0 : i64, scratch_operands = 0 : i64, tpu.core_type = #tpu.core_type<tc>, window_params = [{transform_indices = @transform_0, window_bounds = array<i64: 128, 8>}, {pipeline_mode = #tpu.pipeline_mode<synchronous>, transform_indices = @transform_1, window_bounds = array<i64: 8, 25>}, {pipeline_mode = #tpu.pipeline_mode<synchronous>, transform_indices = @transform_2, window_bounds = array<i64: 25, 5>}, {pipeline_mode = #tpu.pipeline_mode<synchronous>, transform_indices = @transform_3, window_bounds = array<i64: 25, 5>}, {transform_indices = @transform_4, window_bounds = array<i64: 128, 25>}, {transform_indices = @transform_5, window_bounds = array<i64: 128, 5>}, {transform_indices = @transform_6, window_bounds = array<i64: 128, 5>}]} {
    %c0 = arith.constant 0 : index
    %c0_0 = arith.constant 0 : index
    %0 = vector.load %arg1[%c0, %c0_0] : memref<128x8xf32, #tpu.memory_space<vmem>>, vector<128x8xf32>
    %1 = arith.truncf %0 : vector<128x8xf32> to vector<128x8xbf16>
    %c0_1 = arith.constant 0 : index
    %c0_2 = arith.constant 0 : index
    %2 = vector.load %arg2[%c0_1, %c0_2] : memref<8x25xf32, #tpu.memory_space<vmem>>, vector<8x25xf32>
    %3 = arith.truncf %2 : vector<8x25xf32> to vector<8x25xbf16>
    %cst = arith.constant dense<0.000000e+00> : vector<128x25xf32>
    %4 = tpu.matmul %1, %3, %cst {dimension_numbers = #tpu.dot_dimension_numbers<[1], [0], [0], [1], [0, 0, 1, 1], [], []>} : vector<128x8xbf16>, vector<8x25xbf16>, vector<128x25xf32> -> vector<128x25xf32>
    %5 = arith.truncf %4 : vector<128x25xf32> to vector<128x25xbf16>
    %c0_3 = arith.constant 0 : index
    %c0_4 = arith.constant 0 : index
    %6 = vector.load %arg5[%c0_3, %c0_4] : memref<128x25xbf16, #tpu.memory_space<vmem>>, vector<128x25xbf16>
    tpu.vector_store %arg5[%c0_3, %c0_4], %5 {strides = array<i32>} : memref<128x25xbf16, #tpu.memory_space<vmem>>, vector<128x25xbf16>,
    %c0_5 = arith.constant 0 : index
    %c0_6 = arith.constant 0 : index
    %7 = vector.load %arg3[%c0_5, %c0_6] : memref<25x5xf32, #tpu.memory_space<vmem>>, vector<25x5xf32>
    %8 = arith.truncf %7 : vector<25x5xf32> to vector<25x5xbf16>
    %cst_7 = arith.constant dense<0.000000e+00> : vector<128x5xf32>
    %9 = tpu.matmul %5, %8, %cst_7 {dimension_numbers = #tpu.dot_dimension_numbers<[1], [0], [0], [1], [0, 0, 1, 1], [], []>} : vector<128x25xbf16>, vector<25x5xbf16>, vector<128x5xf32> -> vector<128x5xf32>
    %c0_8 = arith.constant 0 : index
    %c0_9 = arith.constant 0 : index
    %10 = vector.load %arg6[%c0_8, %c0_9] : memref<128x5xf32, #tpu.memory_space<vmem>>, vector<128x5xf32>
    tpu.vector_store %arg6[%c0_8, %c0_9], %9 {strides = array<i32>} : memref<128x5xf32, #tpu.memory_space<vmem>>, vector<128x5xf32>,
    %c0_10 = arith.constant 0 : index
    %c0_11 = arith.constant 0 : index
    %11 = vector.load %arg4[%c0_10, %c0_11] : memref<25x5xf32, #tpu.memory_space<vmem>>, vector<25x5xf32>
    %12 = arith.truncf %11 : vector<25x5xf32> to vector<25x5xbf16>
    %cst_12 = arith.constant dense<0.000000e+00> : vector<128x5xf32>
    %13 = tpu.matmul %5, %12, %cst_12 {dimension_numbers = #tpu.dot_dimension_numbers<[1], [0], [0], [1], [0, 0, 1, 1], [], []>} : vector<128x25xbf16>, vector<25x5xbf16>, vector<128x5xf32> -> vector<128x5xf32>
    %c0_13 = arith.constant 0 : index
    %c0_14 = arith.constant 0 : index
    %14 = vector.load %arg7[%c0_13, %c0_14] : memref<128x5xf32, #tpu.memory_space<vmem>>, vector<128x5xf32>
    tpu.vector_store %arg7[%c0_13, %c0_14], %13 {strides = array<i32>} : memref<128x5xf32, #tpu.memory_space<vmem>>, vector<128x5xf32>,
    return
  }
  func.func @transform_0(%arg0: i32) -> (i32, i32) {
    %c0_i32 = arith.constant 0 : i32
    %c0_i32_0 = arith.constant 0 : i32
    return %arg0, %c0_i32 : i32, i32
  }
  func.func @transform_1(%arg0: i32) -> (i32, i32) {
    %c0_i32 = arith.constant 0 : i32
    %c0_i32_0 = arith.constant 0 : i32
    %c0_i32_1 = arith.constant 0 : i32
    return %c0_i32, %c0_i32_0 : i32, i32
  }
  func.func @transform_2(%arg0: i32) -> (i32, i32) {
    %c0_i32 = arith.constant 0 : i32
    %c0_i32_0 = arith.constant 0 : i32
    %c0_i32_1 = arith.constant 0 : i32
    return %c0_i32, %c0_i32_0 : i32, i32
  }
  func.func @transform_3(%arg0: i32) -> (i32, i32) {
    %c0_i32 = arith.constant 0 : i32
    %c0_i32_0 = arith.constant 0 : i32
    %c0_i32_1 = arith.constant 0 : i32
    return %c0_i32, %c0_i32_0 : i32, i32
  }
  func.func @transform_4(%arg0: i32) -> (i32, i32) {
    %c0_i32 = arith.constant 0 : i32
    %c0_i32_0 = arith.constant 0 : i32
    return %arg0, %c0_i32 : i32, i32
  }
  func.func @transform_5(%arg0: i32) -> (i32, i32) {
    %c0_i32 = arith.constant 0 : i32
    %c0_i32_0 = arith.constant 0 : i32
    return %arg0, %c0_i32 : i32, i32
  }
  func.func @transform_6(%arg0: i32) -> (i32, i32) {
    %c0_i32 = arith.constant 0 : i32
    %c0_i32_0 = arith.constant 0 : i32
    return %arg0, %c0_i32 : i32, i32
  }
}

</mosaic_0001>

<bundles_post_ra>
// kernel: tpu_custom_call.1
= control target key start
LH: loop header
LB: loop body
LE: loop exit
PB: predicated region body
PF: predicated region fallthrough
CT: control target
= control target key end

     0   :  { %vm72_vm0 = vcmask 1043456   ;;  %vm47_vm1 = vcmask 64512   ;;  %vm285_vm2 = vcmask 1044480   ;;  %v687_v19 = vmov 65535   ;;  %s1019_s1 = inlined_call_operand.vmem [shape: f32[8,25], index: 1, kind: input, shape index: {}]   ;;  %s1020_s0 = inlined_call_operand.vmem [shape: f32[128,8], index: 0, kind: input, shape index: {}]   ;;  %s1021_s2 = inlined_call_operand.vmem [shape: f32[25,5], index: 2, kind: input, shape index: {}]   ;;  %s1022_s3 = inlined_call_operand.vmem [shape: f32[25,5], index: 3, kind: input, shape index: {}]   ;;  %s1023_s4 = inlined_call_operand.vmem [shape: bf16[128,25], index: 4, kind: output, shape index: {0}]   ;;  %s1024_s5 = inlined_call_operand.vmem [shape: f32[128,5], index: 5, kind: output, shape index: {1}]   ;;  %s1025_s6 = inlined_call_operand.vmem [shape: f32[128,5], index: 6, kind: output, shape index: {2}]  }
   0x1   :  { %v45_v0 = vld [vmem:[%s1019_s1] sm:$0xff]  ;;  %v22_v2 = vld [vmem:[%s1020_s0 + $0x8] sm:$0xff]  ;;  %v23_v5 = vld [vmem:[%s1020_s0 + $0x10] sm:$0xff]  ;;  %v286_v20 = vsel %vm72_vm0, 4294967295, %v687_v19  ;;  %vm237_vm3 = vcmask 199680   ;;  %vm260_vm4 = vcmask 203776  }
   0x2   :  { %v21_v1 = vld [vmem:[%s1020_s0] sm:$0xff]  ;;  %v46_v3 = vpack.c.bf16 %v45_v0, %v45_v0  ;;  %v24_v6 = vld [vmem:[%s1020_s0 + $0x18] sm:$0xff]  ;;  %v26_v8 = vld [vmem:[%s1020_s0 + $0x28] sm:$0xff]  ;;  %v287_v31 = vsel %vm285_vm2, %v286_v20, 0  ;;  %vm388_vm5 = vcmask 39936  }
   0x3   :  { %v37_v4 = vpack.c.bf16 %v22_v2, %v21_v1  ;;  %v25_v7 = vld [vmem:[%s1020_s0 + $0x20] sm:$0xff]  ;;  %v38_v10 = vpack.c.bf16 %v24_v6, %v23_v5  ;;  %v30_v12 = vld [vmem:[%s1020_s0 + $0x48] sm:$0xff]  ;;  %v31_v13 = vld [vmem:[%s1020_s0 + $0x50] sm:$0xff] }
   0x4   :  { %684 = vmatprep.subr.msk.bf16.mxu0 %vm72_vm0, %v46_v3  ;;  %v74_v9 = vsel %vm72_vm0, %v46_v3, 0  ;;  %v29_v11 = vld [vmem:[%s1020_s0 + $0x40] sm:$0xff]  ;;  %v39_v14 = vpack.c.bf16 %v26_v8, %v25_v7  ;;  %685 = vmatprep.subr.msk.bf16.mxu1 %vm72_vm0, %v46_v3  ;;  %v32_v16 = vld [vmem:[%s1020_s0 + $0x58] sm:$0xff]  ;;  %v34_v18 = vld [vmem:[%s1020_s0 + $0x68] sm:$0xff] }
   0x5   :  { %626 = vmatprep.mubr.msk.bf16.mxu0 %vm47_vm1, %v37_v4  ;;  %625 = vmatpush3.bf16.msra.mxu0 %v74_v9  ;;  %v41_v15 = vpack.c.bf16 %v30_v12, %v29_v11  ;;  %v33_v17 = vld [vmem:[%s1020_s0 + $0x60] sm:$0xff]  ;;  %v42_v21 = vpack.c.bf16 %v32_v16, %v31_v13  ;;  %v255_v24 = vld [vmem:[%s1021_s2 + $0x8] sm:$0xff]  ;;  %v256_v29 = vld [vmem:[%s1021_s2 + $0x10] sm:$0xff] }
   0x6   :  { %683 = vmatpush3.bf16.msra.mxu1 %v74_v9  ;;  %v43_v22 = vpack.c.bf16 %v34_v18, %v33_v17  ;;  %v254_v23 = vld [vmem:[%s1021_s2] sm:$0xff]  ;;  %v406_v26 = vld [vmem:[%s1022_s3 + $0x8] sm:$0xff]  ;;  %v257_v30 = vld [vmem:[%s1021_s2 + $0x18] sm:$0x1] }
   0x7   :  { %634 = vmatprep.mubr.msk.bf16.mxu1 %vm47_vm1, %v41_v15  ;;  %v405_v25 = vld [vmem:[%s1022_s3] sm:$0xff]  ;;  %v258_v27 = vpack.c.bf16 %v255_v24, %v254_v23  ;;  %v407_v32 = vld [vmem:[%s1022_s3 + $0x10] sm:$0xff]  ;;  %v28_v34 = vld [vmem:[%s1020_s0 + $0x38] sm:$0xff]  ;;  %v259_v35 = vpack.c.bf16 %v257_v30, %v256_v29 }
   0x8   :  { %627 = vmatmul.mubr.msk.bf16.vlgmr.msra.gmra.mrb[0].mxu0 %vm47_vm1, %v38_v10  ;;  %v409_v28 = vpack.c.bf16 %v406_v26, %v405_v25  ;;  %v27_v33 = vld [vmem:[%s1020_s0 + $0x30] sm:$0xff]  ;;  %v408_v36 = vld [vmem:[%s1022_s3 + $0x18] sm:$0x1] }
   0x9   :  { %630 = vmatprep.mubr.msk.bf16.mxu0 %vm47_vm1, %v39_v14  ;;  %635 = vmatmul.mubr.msk.bf16.vlgmr.msra.gmra.mrb[0].mxu1 %vm47_vm1, %v42_v21  ;;  %v35_v37 = vld [vmem:[%s1020_s0 + $0x70] sm:$0xff]  ;;  %v36_v38 = vld [vmem:[%s1020_s0 + $0x78] sm:$0xff]  ;;  %v410_v39 = vpack.c.bf16 %v408_v36, %v407_v32  ;;  %v289_v40 = vand.u32 %v287_v31, %v259_v35  ;;  %v40_v41 = vpack.c.bf16 %v28_v34, %v27_v33 }
   0xa   :  { %638 = vmatprep.mubr.msk.bf16.mxu1 %vm47_vm1, %v43_v22  ;;  %642 = vmatprep.subr.bf16.mxu1 %v258_v27  ;;  %v44_v43 = vpack.c.bf16 %v36_v38, %v35_v37 }
   0xb   :  { %662 = vmatprep.subr.bf16.mxu0 %v409_v28  ;;  %643 = vmatpush3.bf16.msra.mxu1 %v258_v27  ;;  %v412_v42 = vand.u32 %v410_v39, %v287_v31 }
   0xc   :  { %663 = vmatpush3.bf16.msra.mxu0 %v409_v28  ;;  %644 = vmatprep.subr.bf16.mxu1 %v289_v40 }
   0xd   :  { %664 = vmatprep.subr.bf16.mxu0 %v412_v42 }
   0xf   :  { %645 = vmatpush3.bf16.msra.mxu1 %v289_v40 }
  0x10   :  { %631 = vmatmul.mubr.msk.bf16.gmra.mrb[4].mxu0 %vm47_vm1, %v40_v41 }
  0x11   :  { %639 = vmatmul.mubr.msk.bf16.gmra.mrb[4].mxu1 %vm47_vm1, %v44_v43  ;;  %665 = vmatpush3.bf16.msra.mxu0 %v412_v42 }
  0xdb   :  { %v628_v44 = vpop.f32.mrb[0].mxu0 }
  0xdc   :  { %v581_v45 = vpack.c.bf16 %v628_v44, %v628_v44  ;;  %v110_v46 = vpop.f32.mrb[1].mxu0  ;;  %v636_v47 = vpop.f32.mrb[0].mxu1 }
  0xdd   :  { %v579_v48 = vpack.c.bf16 %v110_v46, %v110_v46  ;;  %v629_v49 = vpop.f32.mrb[2].mxu0  ;;  %v589_v50 = vpack.c.bf16 %v636_v47, %v636_v47  ;;  %v142_v51 = vpop.f32.mrb[1].mxu1 }
  0xde   :  { %240 = vst.msk [vmem:[%s1023_s4 + $0x8] sm:$0xf] %vm237_vm3, %v581_v45  ;;  %v174_v52 = vpack.c.bf16 %v629_v49, %v628_v44  ;;  %v582_v53 = vpack.c.bf16 %v629_v49, %v629_v49  ;;  %v113_v54 = vpop.f32.mrb[3].mxu0  ;;  %v587_v55 = vpack.c.bf16 %v142_v51, %v142_v51  ;;  %v637_v56 = vpop.f32.mrb[2].mxu1 }
  0xdf   :  { %238 = vst.msk [vmem:[%s1023_s4] sm:$0xf] %vm237_vm3, %v579_v48  ;;  %v173_v57 = vpack.c.bf16 %v113_v54, %v110_v46  ;;  %v580_v58 = vpack.c.bf16 %v113_v54, %v113_v54  ;;  %248 = vst.msk [vmem:[%s1023_s4 + $0x28] sm:$0xf] %vm237_vm3, %v589_v50  ;;  %v178_v59 = vpack.c.bf16 %v637_v56, %v636_v47  ;;  %v145_v61 = vpop.f32.mrb[3].mxu1 }
  0xe0   :  { %v590_v60 = vpack.c.bf16 %v637_v56, %v637_v56  ;;  %241 = vst.msk [vmem:[%s1023_s4 + $0xc] sm:$0xf] %vm237_vm3, %v582_v53  ;;  %246 = vst.msk [vmem:[%s1023_s4 + $0x20] sm:$0xf] %vm237_vm3, %v587_v55  ;;  %v177_v62 = vpack.c.bf16 %v145_v61, %v142_v51  ;;  %v588_v63 = vpack.c.bf16 %v145_v61, %v145_v61 }
  0xe1   :  { %239 = vst.msk [vmem:[%s1023_s4 + $0x4] sm:$0xf] %vm237_vm3, %v580_v58  ;;  %646 = vmatprep.mubr.msk.bf16.mxu1 %vm260_vm4, %v173_v57  ;;  %666 = vmatprep.mubr.msk.bf16.mxu0 %vm260_vm4, %v173_v57 }
  0xe2   :  { %249 = vst.msk [vmem:[%s1023_s4 + $0x2c] sm:$0xf] %vm237_vm3, %v590_v60  ;;  %647 = vmatmul.mubr.msk.bf16.vlgmr.msra.gmra.mrb[8].mxu1 %vm260_vm4, %v174_v52  ;;  %667 = vmatmul.mubr.msk.bf16.vlgmr.msra.gmra.mrb[8].mxu0 %vm260_vm4, %v174_v52  ;;  %247 = vst.msk [vmem:[%s1023_s4 + $0x24] sm:$0xf] %vm237_vm3, %v588_v63 }
  0xe3   :  { %v632_v0 = vpop.f32.mrb[4].mxu0 }
  0xe4   :  { %v585_v1 = vpack.c.bf16 %v632_v0, %v632_v0  ;;  %v126_v2 = vpop.f32.mrb[5].mxu0  ;;  %v640_v3 = vpop.f32.mrb[4].mxu1 }
  0xe5   :  { %v583_v4 = vpack.c.bf16 %v126_v2, %v126_v2  ;;  %v633_v5 = vpop.f32.mrb[6].mxu0  ;;  %v593_v6 = vpack.c.bf16 %v640_v3, %v640_v3  ;;  %v158_v7 = vpop.f32.mrb[5].mxu1 }
  0xe6   :  { %244 = vst.msk [vmem:[%s1023_s4 + $0x18] sm:$0xf] %vm237_vm3, %v585_v1  ;;  %v176_v8 = vpack.c.bf16 %v633_v5, %v632_v0  ;;  %v586_v9 = vpack.c.bf16 %v633_v5, %v633_v5  ;;  %v129_v10 = vpop.f32.mrb[7].mxu0  ;;  %v591_v11 = vpack.c.bf16 %v158_v7, %v158_v7  ;;  %v641_v12 = vpop.f32.mrb[6].mxu1 }
  0xe7   :  { %242 = vst.msk [vmem:[%s1023_s4 + $0x10] sm:$0xf] %vm237_vm3, %v583_v4  ;;  %v175_v13 = vpack.c.bf16 %v129_v10, %v126_v2  ;;  %v584_v14 = vpack.c.bf16 %v129_v10, %v129_v10  ;;  %252 = vst.msk [vmem:[%s1023_s4 + $0x38] sm:$0xf] %vm237_vm3, %v593_v6  ;;  %v180_v15 = vpack.c.bf16 %v641_v12, %v640_v3  ;;  %v161_v17 = vpop.f32.mrb[7].mxu1 }
  0xe8   :  { %v594_v16 = vpack.c.bf16 %v641_v12, %v641_v12  ;;  %245 = vst.msk [vmem:[%s1023_s4 + $0x1c] sm:$0xf] %vm237_vm3, %v586_v9  ;;  %250 = vst.msk [vmem:[%s1023_s4 + $0x30] sm:$0xf] %vm237_vm3, %v591_v11  ;;  %v179_v18 = vpack.c.bf16 %v161_v17, %v158_v7  ;;  %v592_v19 = vpack.c.bf16 %v161_v17, %v161_v17 }
  0xe9   :  { %243 = vst.msk [vmem:[%s1023_s4 + $0x14] sm:$0xf] %vm237_vm3, %v584_v14  ;;  %650 = vmatprep.mubr.msk.bf16.mxu1 %vm260_vm4, %v175_v13  ;;  %670 = vmatprep.mubr.msk.bf16.mxu0 %vm260_vm4, %v175_v13 }
  0xea   :  { %253 = vst.msk [vmem:[%s1023_s4 + $0x3c] sm:$0xf] %vm237_vm3, %v594_v16  ;;  %651 = vmatmul.mubr.msk.bf16.gmra.mrb[12].mxu1 %vm260_vm4, %v176_v8  ;;  %671 = vmatmul.mubr.msk.bf16.gmra.mrb[12].mxu0 %vm260_vm4, %v176_v8  ;;  %251 = vst.msk [vmem:[%s1023_s4 + $0x34] sm:$0xf] %vm237_vm3, %v592_v19 }
  0xeb   :  { %654 = vmatprep.mubr.msk.bf16.mxu1 %vm260_vm4, %v177_v62  ;;  %674 = vmatprep.mubr.msk.bf16.mxu0 %vm260_vm4, %v177_v62 }
  0xf2   :  { %655 = vmatmul.mubr.msk.bf16.gmra.mrb[16].mxu1 %vm260_vm4, %v178_v59  ;;  %675 = vmatmul.mubr.msk.bf16.gmra.mrb[16].mxu0 %vm260_vm4, %v178_v59 }
  0xf3   :  { %658 = vmatprep.mubr.msk.bf16.mxu1 %vm260_vm4, %v179_v18  ;;  %678 = vmatprep.mubr.msk.bf16.mxu0 %vm260_vm4, %v179_v18 }
  0xfa   :  { %659 = vmatmul.mubr.msk.bf16.gmra.mrb[20].mxu1 %vm260_vm4, %v180_v15  ;;  %679 = vmatmul.mubr.msk.bf16.gmra.mrb[20].mxu0 %vm260_vm4, %v180_v15 }
 0x1b5   :  { %v648_v20 = vpop.f32.mrb[8].mxu1  ;;  %v668_v21 = vpop.f32.mrb[8].mxu0 }
 0x1b6   :  { %391 = vst.msk [vmem:[%s1024_s5 + $0x10] sm:$0xff] %vm388_vm5, %v648_v20  ;;  %513 = vst.msk [vmem:[%s1025_s6 + $0x10] sm:$0xff] %vm388_vm5, %v668_v21  ;;  %v325_v22 = vpop.f32.mrb[9].mxu1  ;;  %v448_v23 = vpop.f32.mrb[9].mxu0 }
 0x1b7   :  { %389 = vst.msk [vmem:[%s1024_s5] sm:$0xff] %vm388_vm5, %v325_v22  ;;  %511 = vst.msk [vmem:[%s1025_s6] sm:$0xff] %vm388_vm5, %v448_v23  ;;  %v649_v24 = vpop.f32.mrb[10].mxu1  ;;  %v669_v25 = vpop.f32.mrb[10].mxu0 }
 0x1b8   :  { %392 = vst.msk [vmem:[%s1024_s5 + $0x18] sm:$0xff] %vm388_vm5, %v649_v24  ;;  %514 = vst.msk [vmem:[%s1025_s6 + $0x18] sm:$0xff] %vm388_vm5, %v669_v25  ;;  %v328_v26 = vpop.f32.mrb[11].mxu1  ;;  %v451_v27 = vpop.f32.mrb[11].mxu0 }
 0x1b9   :  { %390 = vst.msk [vmem:[%s1024_s5 + $0x8] sm:$0xff] %vm388_vm5, %v328_v26  ;;  %512 = vst.msk [vmem:[%s1025_s6 + $0x8] sm:$0xff] %vm388_vm5, %v451_v27 }
 0x1bd   :  { %v652_v28 = vpop.f32.mrb[12].mxu1  ;;  %v672_v29 = vpop.f32.mrb[12].mxu0 }
 0x1be   :  { %395 = vst.msk [vmem:[%s1024_s5 + $0x30] sm:$0xff] %vm388_vm5, %v652_v28  ;;  %517 = vst.msk [vmem:[%s1025_s6 + $0x30] sm:$0xff] %vm388_vm5, %v672_v29  ;;  %v341_v30 = vpop.f32.mrb[13].mxu1  ;;  %v464_v31 = vpop.f32.mrb[13].mxu0 }
 0x1bf   :  { %393 = vst.msk [vmem:[%s1024_s5 + $0x20] sm:$0xff] %vm388_vm5, %v341_v30  ;;  %515 = vst.msk [vmem:[%s1025_s6 + $0x20] sm:$0xff] %vm388_vm5, %v464_v31  ;;  %v653_v32 = vpop.f32.mrb[14].mxu1  ;;  %v673_v33 = vpop.f32.mrb[14].mxu0 }
 0x1c0   :  { %396 = vst.msk [vmem:[%s1024_s5 + $0x38] sm:$0xff] %vm388_vm5, %v653_v32  ;;  %518 = vst.msk [vmem:[%s1025_s6 + $0x38] sm:$0xff] %vm388_vm5, %v673_v33  ;;  %v344_v34 = vpop.f32.mrb[15].mxu1  ;;  %v467_v35 = vpop.f32.mrb[15].mxu0 }
 0x1c1   :  { %394 = vst.msk [vmem:[%s1024_s5 + $0x28] sm:$0xff] %vm388_vm5, %v344_v34  ;;  %516 = vst.msk [vmem:[%s1025_s6 + $0x28] sm:$0xff] %vm388_vm5, %v467_v35 }
 0x1c5   :  { %v656_v36 = vpop.f32.mrb[16].mxu1  ;;  %v676_v37 = vpop.f32.mrb[16].mxu0 }
 0x1c6   :  { %399 = vst.msk [vmem:[%s1024_s5 + $0x50] sm:$0xff] %vm388_vm5, %v656_v36  ;;  %521 = vst.msk [vmem:[%s1025_s6 + $0x50] sm:$0xff] %vm388_vm5, %v676_v37  ;;  %v357_v38 = vpop.f32.mrb[17].mxu1  ;;  %v480_v39 = vpop.f32.mrb[17].mxu0 }
 0x1c7   :  { %397 = vst.msk [vmem:[%s1024_s5 + $0x40] sm:$0xff] %vm388_vm5, %v357_v38  ;;  %519 = vst.msk [vmem:[%s1025_s6 + $0x40] sm:$0xff] %vm388_vm5, %v480_v39  ;;  %v657_v40 = vpop.f32.mrb[18].mxu1  ;;  %v677_v41 = vpop.f32.mrb[18].mxu0 }
 0x1c8   :  { %400 = vst.msk [vmem:[%s1024_s5 + $0x58] sm:$0xff] %vm388_vm5, %v657_v40  ;;  %522 = vst.msk [vmem:[%s1025_s6 + $0x58] sm:$0xff] %vm388_vm5, %v677_v41  ;;  %v360_v42 = vpop.f32.mrb[19].mxu1  ;;  %v483_v43 = vpop.f32.mrb[19].mxu0 }
 0x1c9   :  { %398 = vst.msk [vmem:[%s1024_s5 + $0x48] sm:$0xff] %vm388_vm5, %v360_v42  ;;  %520 = vst.msk [vmem:[%s1025_s6 + $0x48] sm:$0xff] %vm388_vm5, %v483_v43 }
 0x1cd   :  { %v660_v44 = vpop.f32.mrb[20].mxu1  ;;  %v680_v45 = vpop.f32.mrb[20].mxu0 }
 0x1ce   :  { %403 = vst.msk [vmem:[%s1024_s5 + $0x70] sm:$0xff] %vm388_vm5, %v660_v44  ;;  %525 = vst.msk [vmem:[%s1025_s6 + $0x70] sm:$0xff] %vm388_vm5, %v680_v45  ;;  %v373_v46 = vpop.f32.mrb[21].mxu1  ;;  %v496_v47 = vpop.f32.mrb[21].mxu0 }
 0x1cf   :  { %401 = vst.msk [vmem:[%s1024_s5 + $0x60] sm:$0xff] %vm388_vm5, %v373_v46  ;;  %523 = vst.msk [vmem:[%s1025_s6 + $0x60] sm:$0xff] %vm388_vm5, %v496_v47  ;;  %v661_v48 = vpop.f32.mrb[22].mxu1  ;;  %v681_v49 = vpop.f32.mrb[22].mxu0 }
 0x1d0   :  { %404 = vst.msk [vmem:[%s1024_s5 + $0x78] sm:$0xff] %vm388_vm5, %v661_v48  ;;  %526 = vst.msk [vmem:[%s1025_s6 + $0x78] sm:$0xff] %vm388_vm5, %v681_v49  ;;  %v376_v50 = vpop.f32.mrb[23].mxu1  ;;  %v499_v51 = vpop.f32.mrb[23].mxu0 }
 0x1d1   :  { %402 = vst.msk [vmem:[%s1024_s5 + $0x68] sm:$0xff] %vm388_vm5, %v376_v50  ;;  %524 = vst.msk [vmem:[%s1025_s6 + $0x68] sm:$0xff] %vm388_vm5, %v499_v51 }

</bundles_post_ra>
